<compile_context>
chip_gen: v6e
topology: v6e:2x2x1
jax: 0.10.0
libtpu: 0.0.40
codegen_flags: <defaults>
</compile_context>

<pallas_src>
import numpy as np
import jax
import jax.numpy as jnp
from jax.experimental import pallas as pl
from jax.experimental.pallas import tpu as pltpu


# ---------------------------------------------------------------------------
# Pallas kernels: tiled matmul  y = x @ W  (bf16 inputs, f32 MXU accumulation)
# ---------------------------------------------------------------------------
def _matmul_kernel_single_k(x_ref, w_ref, o_ref):
    # K fits in one strip: the resident f32 output block IS the accumulator.
    o_ref[...] = jnp.dot(x_ref[...], w_ref[...],
                         preferred_element_type=jnp.float32).astype(o_ref.dtype)


def _matmul_kernel_acc(x_ref, w_ref, o_ref, acc_ref):
    @pl.when(pl.program_id(2) == 0)
    def _():
        acc_ref[...] = jnp.zeros_like(acc_ref)

    acc_ref[...] += jnp.dot(x_ref[...], w_ref[...],
                            preferred_element_type=jnp.float32)

    # Epilogue only on the last K step (was previously an un-gated copy per step).
    @pl.when(pl.program_id(2) == pl.num_programs(2) - 1)
    def _():
        o_ref[...] = acc_ref[...].astype(o_ref.dtype)


# ---------------------------------------------------------------------------
# Tile / VMEM-budget selection
# ---------------------------------------------------------------------------
_TM_CANDIDATES = (1024, 512, 256, 128, 64, 32, 16, 8)
_TN_CANDIDATES = (1024, 512, 256, 128)
_TK_CANDIDATES = (2048, 1024, 512, 256, 128)


def _vmem_budget_and_limit():
    cap = None
    try:
        info = pltpu.get_tpu_info()
        cap = getattr(info, "vmem_capacity_bytes", None)
    except Exception:
        cap = None
    if not cap:
        cap = 64 * 1024 * 1024                    # conservative: v7x per-TC VMEM
    cap = int(min(int(cap), 128 * 1024 * 1024))   # v5e/v6e physical ceiling
    budget = int(cap * 0.55)                      # tiling budget (headroom for Mosaic scratch)
    vmem_limit = int(cap * 0.80)                  # scoped VMEM limit handed to the compiler
    return budget, vmem_limit


def _vmem_bytes(tm, tn, tk, k_steps, in_bytes):
    w_bufs = 3 if k_steps > 1 else 2              # Buffered(3) weight stream when K is tiled
    acc = tm * tn * 4 if k_steps > 1 else 0       # f32 accumulator scratch
    return (2 * tm * tk * in_bytes                # x tiles, double-buffered
            + w_bufs * tk * tn * in_bytes         # merged-W tiles
            + 2 * tm * tn * 4                     # f32 output tiles, double-buffered
            + acc)


def _choose_tiles(M, N, K, in_bytes, budget):
    """M, N, K are already padded (M % 8 == 0, N % 128 == 0, K % 128 == 0)."""
    if K <= 2048:
        tk = K                                    # single K strip -> no accumulator needed
    else:
        tk = max(t for t in _TK_CANDIDATES if K % t == 0)
    k_steps = K // tk

    tm_opts = [t for t in _TM_CANDIDATES if M % t == 0] or [M]
    tn_opts = [t for t in _TN_CANDIDATES if N % t == 0] or [N]

    best = None
    for tm in tm_opts:                            # descending: biggest tiles first
        for tn in tn_opts:
            if _vmem_bytes(tm, tn, tk, k_steps, in_bytes) > budget:
                continue
            if best is None:
                best = (tm, tn)
            if (M // tm) * (N // tn) >= 2:        # >=2 blocks on the parallel axes (v7x)
                return tm, tn, tk
    if best is not None:
        return best[0], best[1], tk
    return tm_opts[-1], tn_opts[-1], tk           # tiny tiles; always fits in practice


def _pad_to(a, mult, axis):
    size = a.shape[axis]
    pad = (-size) % mult
    if pad == 0:
        return a
    widths = [(0, 0)] * a.ndim
    widths[axis] = (0, pad)
    return jnp.pad(a, widths)


# ---------------------------------------------------------------------------
# Fused matmul wrapper
# ---------------------------------------------------------------------------
def ttm_fused_matmul(x, w, *, compute_dtype=jnp.bfloat16):
    """(M, K) @ (K, N) as one Pallas TPU kernel. bf16 inputs, f32 accumulation/output."""
    M, K = x.shape
    K2, N = w.shape
    assert K == K2
    in_bytes = int(np.dtype(compute_dtype).itemsize)

    # Narrow cast + lane/sublane-aligned zero padding (no ragged tiles, no masked stores).
    xp = _pad_to(_pad_to(x.astype(compute_dtype), 8, 0), 128, 1)
    wp = _pad_to(_pad_to(w.astype(compute_dtype), 128, 0), 128, 1)
    Mp, Kp = xp.shape
    Np = wp.shape[1]

    budget, vmem_limit = _vmem_budget_and_limit()
    tm, tn, tk = _choose_tiles(Mp, Np, Kp, in_bytes, budget)
    k_steps = Kp // tk

    cost = pl.CostEstimate(
        flops=2 * Mp * Np * Kp,
        bytes_accessed=(Mp * Kp + Kp * Np) * in_bytes + Mp * Np * 4,
        transcendentals=0,
    )

    if k_steps == 1:
        y = pl.pallas_call(
            _matmul_kernel_single_k,
            out_shape=jax.ShapeDtypeStruct((Mp, Np), jnp.float32),
            grid_spec=pltpu.PrefetchScalarGridSpec(
                num_scalar_prefetch=0,
                grid=(Mp // tm, Np // tn),
                in_specs=[
                    pl.BlockSpec((tm, Kp), lambda i, j: (i, 0)),   # x batch tile
                    pl.BlockSpec((Kp, tn), lambda i, j: (0, j)),   # merged-W column strip
                ],
                out_specs=pl.BlockSpec((tm, tn), lambda i, j: (i, j)),
            ),
            compiler_params=pltpu.CompilerParams(
                dimension_semantics=("parallel", "parallel"),
                vmem_limit_bytes=vmem_limit,
            ),
            cost_estimate=cost,
        )(xp, wp)
    else:
        y = pl.pallas_call(
            _matmul_kernel_acc,
            out_shape=jax.ShapeDtypeStruct((Mp, Np), jnp.float32),
            grid_spec=pltpu.PrefetchScalarGridSpec(
                num_scalar_prefetch=0,
                grid=(Mp // tm, Np // tn, k_steps),
                in_specs=[
                    pl.BlockSpec((tm, tk), lambda i, j, k: (i, k)),
                    pl.BlockSpec((tk, tn), lambda i, j, k: (k, j),
                                 pipeline_mode=pl.Buffered(3)),     # deeper weight stream
                ],
                out_specs=pl.BlockSpec((tm, tn), lambda i, j, k: (i, j)),
                scratch_shapes=[pltpu.VMEM((tm, tn), jnp.float32)],
            ),
            compiler_params=pltpu.CompilerParams(
                dimension_semantics=("parallel", "parallel", "arbitrary"),
                vmem_limit_bytes=vmem_limit,
            ),
            cost_estimate=cost,
        )(xp, wp)

    if (Mp, Np) != (M, N):
        y = y[:M, :N]
    return y


# ---------------------------------------------------------------------------
# TTM forward
# ---------------------------------------------------------------------------
def merge_tt_cores(cores):
    """Merge TT cores into the full (dim_in, dim_out) matrix.

    cores[k]: (r_{k-1}, d_k_in, d_k_out, r_k) with r_0 = r_n = 1.  Row index is
    row-major over (i_1..i_n), column over (o_1..o_n) -- identical to the torch
    module's `full_tensor`.  Tiny setup contraction outside the Pallas hot path.
    """
    w = cores[0][0]                                  # (d1, D1, r1)
    for core in cores[1:]:
        di, do, _ = w.shape
        r1, d, D, r2 = core.shape
        w = jnp.einsum('xyr,rabz->xaybz', w, core)
        w = w.reshape(di * d, do * D, r2)
    return w[..., 0]                                 # (dim_in, dim_out)


def ttm_forward(x, cores, compute_dtype=jnp.bfloat16):
    """x: (B, dim_in) f32;  cores[i]: (r_{i-1}, d_i, D_i, r_i) f32."""
    w = merge_tt_cores(cores)                        # cheap parameter prep
    return ttm_fused_matmul(x, w, compute_dtype=compute_dtype)


# ---------------------------------------------------------------------------
# Deterministic parameter init mirroring PlainTTMContainer.__init__
# ---------------------------------------------------------------------------
def init_ttm_cores(key, dims, rank):
    n = len(dims)
    ranks = [rank] * (n - 1)
    for i, (d1, d2) in enumerate(dims):              # rank clipping, as in the module
        r1 = ranks[i - 1] if i else 1
        r2 = ranks[i] if i < len(ranks) else 1
        if d1 * d2 * r1 < r2:
            ranks[i] = d1 * d2 * r1
    full_ranks = [1] + ranks + [1]
    keys = jax.random.split(key, n)
    cores = []
    for i, (d1, d2) in enumerate(dims):
        r1, r2 = full_ranks[i], full_ranks[i + 1]
        c = jax.random.normal(keys[i], (r1, d1, d2, r2),
                              dtype=jnp.float32) / np.sqrt(r1)
        cores.append(c)
    cores[-1] = cores[-1] * 0.02                     # REQUIRED_ELEMENT_STD
    return cores


# ---------------------------------------------------------------------------
if __name__ == "__main__":
    dims = [(8, 8), (8, 8), (8, 8)]   # dims_in = (8,8,8) -> dim_in = 512, dim_out = 512
    rank = 8
    batch = 16

    key = jax.random.PRNGKey(0)
    k_cores, k_x = jax.random.split(key)
    cores = init_ttm_cores(k_cores, dims, rank)
    dim_in = int(np.prod([d for d, _ in dims]))
    dim_out = int(np.prod([D for _, D in dims]))
    x = jax.random.normal(k_x, (batch, dim_in), dtype=jnp.float32)

    fwd = jax.jit(ttm_forward)
    y = jax.block_until_ready(fwd(x, cores))
    assert y.shape == (batch, dim_out), y.shape
    assert y.dtype == jnp.float32, y.dtype

    # (1) tight check against a same-precision (bf16-input, f32-accumulate) matmul
    w_full = merge_tt_cores(cores)
    y_bf16_ref = jnp.dot(x.astype(jnp.bfloat16).astype(jnp.float32),
                         w_full.astype(jnp.bfloat16).astype(jnp.float32),
                         precision='highest')
    err_kernel = float(jnp.max(jnp.abs(y - y_bf16_ref)))
    assert err_kernel < 1e-3, f"kernel vs same-precision ref: {err_kernel}"

    # (2) loose check against the full-precision einsum_forward reference
    #     (bf16 inputs cost ~0.4% relative error; tolerance scaled to output magnitude)
    x_r = x.reshape((batch,) + tuple(d for d, _ in dims))
    y_ref = jnp.einsum('aAr,rbBs,scC,nabc->nABC',
                       cores[0][0], cores[1], cores[2][..., 0], x_r,
                       precision='highest').reshape(batch, -1)
    scale = float(jnp.max(jnp.abs(y_ref)))
    err = float(jnp.max(jnp.abs(y - y_ref)))
    assert err < 3e-2 * max(1.0, scale), f"max abs err {err} (scale {scale})"

    print("KERNEL_OK")
</pallas_src>

<mosaic_0001>
module attributes {stable_mosaic.version = 11 : i64} {
  func.func @_matmul_kernel_single_k(%arg0: i32, %arg1: i32, %arg2: memref<16x512xbf16, #tpu.memory_space<vmem>>, %arg3: memref<512x256xbf16, #tpu.memory_space<vmem>>, %arg4: memref<16x256xf32, #tpu.memory_space<vmem>>) attributes {dimension_semantics = [#tpu.dimension_semantics<parallel>, #tpu.dimension_semantics<parallel>], iteration_bounds = array<i64: 1, 2>, scalar_prefetch = 0 : i64, scratch_operands = 0 : i64, tpu.core_type = #tpu.core_type<tc>, window_params = [{transform_indices = @transform_0, window_bounds = array<i64: 16, 512>}, {transform_indices = @transform_1, window_bounds = array<i64: 512, 256>}, {transform_indices = @transform_2, window_bounds = array<i64: 16, 256>}]} {
    %c0 = arith.constant 0 : index
    %c0_0 = arith.constant 0 : index
    %0 = vector.load %arg2[%c0, %c0_0] : memref<16x512xbf16, #tpu.memory_space<vmem>>, vector<16x512xbf16>
    %c0_1 = arith.constant 0 : index
    %c0_2 = arith.constant 0 : index
    %1 = vector.load %arg3[%c0_1, %c0_2] : memref<512x256xbf16, #tpu.memory_space<vmem>>, vector<512x256xbf16>
    %cst = arith.constant dense<0.000000e+00> : vector<16x256xf32>
    %2 = tpu.matmul %0, %1, %cst {dimension_numbers = #tpu.dot_dimension_numbers<[1], [0], [0], [1], [0, 0, 1, 1], [], []>} : vector<16x512xbf16>, vector<512x256xbf16>, vector<16x256xf32> -> vector<16x256xf32>
    %c0_3 = arith.constant 0 : index
    %c0_4 = arith.constant 0 : index
    %3 = vector.load %arg4[%c0_3, %c0_4] : memref<16x256xf32, #tpu.memory_space<vmem>>, vector<16x256xf32>
    tpu.vector_store %arg4[%c0_3, %c0_4], %2 {strides = array<i32>} : memref<16x256xf32, #tpu.memory_space<vmem>>, vector<16x256xf32>,
    return
  }
  func.func @transform_0(%arg0: i32, %arg1: i32) -> (i32, i32) {
    %c0_i32 = arith.constant 0 : i32
    %c0_i32_0 = arith.constant 0 : i32
    return %arg0, %c0_i32 : i32, i32
  }
  func.func @transform_1(%arg0: i32, %arg1: i32) -> (i32, i32) {
    %c0_i32 = arith.constant 0 : i32
    %c0_i32_0 = arith.constant 0 : i32
    return %c0_i32, %arg1 : i32, i32
  }
  func.func @transform_2(%arg0: i32, %arg1: i32) -> (i32, i32) {
    %c0_i32 = arith.constant 0 : i32
    return %arg0, %arg1 : i32, i32
  }
}

</mosaic_0001>

<bundles_post_ra>
// kernel: ttm_forward.1
= control target key start
LH: loop header
LB: loop body
LE: loop exit
PB: predicated region body
PF: predicated region fallthrough
CT: control target
= control target key end

     0   :  { %7 = vsyncpa [#allocation4], 0  ;;  %s1757_s0 = inlined_call_operand.vmem [shape: bf16[16,512], index: 0, kind: input, shape index: {}]   ;;  %s1758_s1 = inlined_call_operand.vmem [shape: bf16[512,512], index: 1, kind: input, shape index: {}]   ;;  %s1759_s2 = inlined_call_operand.hbm [shape: f32[16,512], index: 2, kind: output, shape index: {}]  }
   0x1   :  { %9 = vsyncpa [#allocation4 + $0x1], 0  ;;  %s1424_s9 = smov 0   ;;  %s1426_s10 = smov 0  }
   0x2   :  { %s1428_s11 = smov 0   ;;  %s1430_s12 = smov 0  }
   0x3   :  { %s1432_s13 = smov 0   ;;  %s1434_s14 = smov 0  }
   0x4 LB: > { %s1081_s15 = sadd.s32 4294967295, %s1403_s14   ;;  %s1082_s16 = sadd.s32 4294967294, %s1403_s14   ;;  %s1403_s14 = sphi %s1434_s14, %s15_s14   ;;  %s1399_s13 = sphi %s1432_s13, %s1766_s13   ;;  %s1395_s12 = sphi %s1430_s12, %s1765_s12   ;;  %s1391_s11 = sphi %s1428_s11, %s1764_s11   ;;  %s1387_s10 = sphi %s1426_s10, %s1763_s10   ;;  %s1383_s9 = sphi %s1424_s9, %s1762_s9  }
   0x5   : > { %s24_s17 = sadd.s32 1, %s1399_s13  ;;  %s60_s18 = sadd.s32 1, %s1391_s11 }
   0x6   : > { %p25_p0 = scmp.ge.s32.totalorder %s24_s17, 2  ;;  %p67_p1 = scmp.ne.s32.totalorder %s1391_s11, %s1387_s10 }
   0x7   : > { %p68_p2 = scmp.eq.s32.totalorder %s1403_s14, 0  ;;  %p99_p3 = scmp.eq.s32.totalorder %s1081_s15, 1 }
   0x8   : > { %s1768_s17 = smov (%p25_p0, %s24_s17), 0  ;;  %p104_p6 = scmp.ne.s32.totalorder %s1387_s10, %s1383_s9 }
   0x9   : > { %p69_p4 = por %p68_p2, %p67_p1  ;;  %p1463_p5 = por %p99_p3, %p67_p1 }
   0xa   : > { %s57_s20 = ssub.s32 %s1399_s13, %s1768_s17  ;;  %p105_p8 = scmp.eq.s32.totalorder %s1082_s16, 1 }
   0xb   : > { %p58_p7 = scmp.eq.s32.totalorder %s57_s20, 0  ;;  %p1085_p10 = scmp.ge.s32.totalorder %s1403_s14, 2 }
   0xc   : > { %p1474_p9 = por %p105_p8, %p104_p6 }
   0xd   : > { %s1472_s21 = scalar_select %p58_p7, %s1391_s11, %s60_s18  }
   0xe   : > { %131 = sbr.rel (%p1085_p10) target bundleno = 55 (0x37), region = 20 }
  0x13   : > { %134 = sbr.rel (!%p69_p4) target bundleno = 55 (0x37), region = 24  ;;  %s136_s23 = sand.u32 (%p69_p4), 1, %s1391_s11  }
  0x14   : > { %s1165_s24 = sshll.u32 (%p69_p4), %s1399_s13, 3  ;;  %s1086_s25 = sshll.u32 (%p69_p4), %s136_s23, 9 }
  0x15   : > { %s1486_s28 = scalar_lea.vmem (%p69_p4), %s1758_s1, %s1165_s24  ;;  %s1491_s29 = scalar_lea.vmem (%p69_p4), [#allocation2], %s1086_s25 }
  0x16   : > { %v296_v0 = vld [vmem:[%s1486_s28] sm:$0xff] (%p69_p4)  ;;  %v298_v1 = vld [vmem:[%s1486_s28 + $0x10] sm:$0xff] (%p69_p4) }
  0x17   : > { %v300_v2 = vld [vmem:[%s1486_s28 + $0x20] sm:$0xff] (%p69_p4)  ;;  %297 = vst [vmem:[%s1491_s29] sm:$0xff] (%p69_p4), %v296_v0  ;;  %299 = vst [vmem:[%s1491_s29 + $0x8] sm:$0xff] (%p69_p4), %v298_v1  ;;  %v302_v3 = vld [vmem:[%s1486_s28 + $0x30] sm:$0xff] (%p69_p4) }
  0x18   : > { %301 = vst [vmem:[%s1491_s29 + $0x10] sm:$0xff] %v300_v2  ;;  %v304_v4 = vld [vmem:[%s1486_s28 + $0x40] sm:$0xff]  ;;  %v306_v5 = vld [vmem:[%s1486_s28 + $0x50] sm:$0xff]  ;;  %303 = vst [vmem:[%s1491_s29 + $0x18] sm:$0xff] %v302_v3 }
  0x19   : > { %305 = vst [vmem:[%s1491_s29 + $0x20] sm:$0xff] %v304_v4  ;;  %307 = vst [vmem:[%s1491_s29 + $0x28] sm:$0xff] %v306_v5  ;;  %v308_v6 = vld [vmem:[%s1486_s28 + $0x60] sm:$0xff]  ;;  %v310_v7 = vld [vmem:[%s1486_s28 + $0x70] sm:$0xff] }
  0x1a   : > { %v312_v8 = vld [vmem:[%s1486_s28 + $0x80] sm:$0xff]  ;;  %309 = vst [vmem:[%s1491_s29 + $0x30] sm:$0xff] %v308_v6  ;;  %311 = vst [vmem:[%s1491_s29 + $0x38] sm:$0xff] %v310_v7  ;;  %v314_v9 = vld [vmem:[%s1486_s28 + $0x90] sm:$0xff] }
  0x1b   : > { %313 = vst [vmem:[%s1491_s29 + $0x40] sm:$0xff] %v312_v8  ;;  %v316_v10 = vld [vmem:[%s1486_s28 + $0xa0] sm:$0xff]  ;;  %v318_v11 = vld [vmem:[%s1486_s28 + $0xb0] sm:$0xff]  ;;  %315 = vst [vmem:[%s1491_s29 + $0x48] sm:$0xff] %v314_v9 }
  0x1c   : > { %317 = vst [vmem:[%s1491_s29 + $0x50] sm:$0xff] %v316_v10  ;;  %319 = vst [vmem:[%s1491_s29 + $0x58] sm:$0xff] %v318_v11  ;;  %v320_v12 = vld [vmem:[%s1486_s28 + $0xc0] sm:$0xff]  ;;  %v322_v13 = vld [vmem:[%s1486_s28 + $0xd0] sm:$0xff] }
  0x1d   : > { %v324_v14 = vld [vmem:[%s1486_s28 + $0xe0] sm:$0xff]  ;;  %321 = vst [vmem:[%s1491_s29 + $0x60] sm:$0xff] %v320_v12  ;;  %323 = vst [vmem:[%s1491_s29 + $0x68] sm:$0xff] %v322_v13  ;;  %v326_v15 = vld [vmem:[%s1486_s28 + $0xf0] sm:$0xff] }
  0x1e   : > { %325 = vst [vmem:[%s1491_s29 + $0x70] sm:$0xff] %v324_v14  ;;  %v328_v16 = vld [vmem:[%s1486_s28 + $0x100] sm:$0xff]  ;;  %v330_v17 = vld [vmem:[%s1486_s28 + $0x110] sm:$0xff]  ;;  %327 = vst [vmem:[%s1491_s29 + $0x78] sm:$0xff] %v326_v15 }
  0x1f   : > { %329 = vst [vmem:[%s1491_s29 + $0x80] sm:$0xff] %v328_v16  ;;  %331 = vst [vmem:[%s1491_s29 + $0x88] sm:$0xff] %v330_v17  ;;  %v332_v18 = vld [vmem:[%s1486_s28 + $0x120] sm:$0xff]  ;;  %v334_v19 = vld [vmem:[%s1486_s28 + $0x130] sm:$0xff] }
  0x20   : > { %v336_v20 = vld [vmem:[%s1486_s28 + $0x140] sm:$0xff]  ;;  %333 = vst [vmem:[%s1491_s29 + $0x90] sm:$0xff] %v332_v18  ;;  %335 = vst [vmem:[%s1491_s29 + $0x98] sm:$0xff] %v334_v19  ;;  %v338_v21 = vld [vmem:[%s1486_s28 + $0x150] sm:$0xff] }
  0x21   : > { %337 = vst [vmem:[%s1491_s29 + $0xa0] sm:$0xff] %v336_v20  ;;  %v340_v22 = vld [vmem:[%s1486_s28 + $0x160] sm:$0xff]  ;;  %v342_v23 = vld [vmem:[%s1486_s28 + $0x170] sm:$0xff]  ;;  %339 = vst [vmem:[%s1491_s29 + $0xa8] sm:$0xff] %v338_v21 }
  0x22   : > { %341 = vst [vmem:[%s1491_s29 + $0xb0] sm:$0xff] %v340_v22  ;;  %343 = vst [vmem:[%s1491_s29 + $0xb8] sm:$0xff] %v342_v23  ;;  %v344_v24 = vld [vmem:[%s1486_s28 + $0x180] sm:$0xff]  ;;  %v346_v25 = vld [vmem:[%s1486_s28 + $0x190] sm:$0xff] }
  0x23   : > { %v348_v26 = vld [vmem:[%s1486_s28 + $0x1a0] sm:$0xff]  ;;  %345 = vst [vmem:[%s1491_s29 + $0xc0] sm:$0xff] %v344_v24  ;;  %347 = vst [vmem:[%s1491_s29 + $0xc8] sm:$0xff] %v346_v25  ;;  %v350_v27 = vld [vmem:[%s1486_s28 + $0x1b0] sm:$0xff] }
  0x24   : > { %349 = vst [vmem:[%s1491_s29 + $0xd0] sm:$0xff] %v348_v26  ;;  %v352_v28 = vld [vmem:[%s1486_s28 + $0x1c0] sm:$0xff]  ;;  %v354_v29 = vld [vmem:[%s1486_s28 + $0x1d0] sm:$0xff]  ;;  %351 = vst [vmem:[%s1491_s29 + $0xd8] sm:$0xff] %v350_v27 }
  0x25   : > { %353 = vst [vmem:[%s1491_s29 + $0xe0] sm:$0xff] %v352_v28  ;;  %355 = vst [vmem:[%s1491_s29 + $0xe8] sm:$0xff] %v354_v29  ;;  %v356_v30 = vld [vmem:[%s1486_s28 + $0x1e0] sm:$0xff]  ;;  %v358_v31 = vld [vmem:[%s1486_s28 + $0x1f0] sm:$0xff] }
  0x26   : > { %v360_v32 = vld [vmem:[%s1486_s28 + $0x200] sm:$0xff]  ;;  %357 = vst [vmem:[%s1491_s29 + $0xf0] sm:$0xff] %v356_v30  ;;  %359 = vst [vmem:[%s1491_s29 + $0xf8] sm:$0xff] %v358_v31  ;;  %v362_v33 = vld [vmem:[%s1486_s28 + $0x210] sm:$0xff] }
  0x27   : > { %361 = vst [vmem:[%s1491_s29 + $0x100] sm:$0xff] %v360_v32  ;;  %v364_v34 = vld [vmem:[%s1486_s28 + $0x220] sm:$0xff]  ;;  %v366_v35 = vld [vmem:[%s1486_s28 + $0x230] sm:$0xff]  ;;  %363 = vst [vmem:[%s1491_s29 + $0x108] sm:$0xff] %v362_v33 }
  0x28   : > { %365 = vst [vmem:[%s1491_s29 + $0x110] sm:$0xff] %v364_v34  ;;  %367 = vst [vmem:[%s1491_s29 + $0x118] sm:$0xff] %v366_v35  ;;  %v368_v36 = vld [vmem:[%s1486_s28 + $0x240] sm:$0xff]  ;;  %v370_v37 = vld [vmem:[%s1486_s28 + $0x250] sm:$0xff] }
  0x29   : > { %v372_v38 = vld [vmem:[%s1486_s28 + $0x260] sm:$0xff]  ;;  %369 = vst [vmem:[%s1491_s29 + $0x120] sm:$0xff] %v368_v36  ;;  %371 = vst [vmem:[%s1491_s29 + $0x128] sm:$0xff] %v370_v37  ;;  %v374_v39 = vld [vmem:[%s1486_s28 + $0x270] sm:$0xff] }
  0x2a   : > { %373 = vst [vmem:[%s1491_s29 + $0x130] sm:$0xff] %v372_v38  ;;  %v376_v40 = vld [vmem:[%s1486_s28 + $0x280] sm:$0xff]  ;;  %v378_v41 = vld [vmem:[%s1486_s28 + $0x290] sm:$0xff]  ;;  %375 = vst [vmem:[%s1491_s29 + $0x138] sm:$0xff] %v374_v39 }
  0x2b   : > { %377 = vst [vmem:[%s1491_s29 + $0x140] sm:$0xff] %v376_v40  ;;  %379 = vst [vmem:[%s1491_s29 + $0x148] sm:$0xff] %v378_v41  ;;  %v380_v42 = vld [vmem:[%s1486_s28 + $0x2a0] sm:$0xff]  ;;  %v382_v43 = vld [vmem:[%s1486_s28 + $0x2b0] sm:$0xff] }
  0x2c   : > { %v384_v44 = vld [vmem:[%s1486_s28 + $0x2c0] sm:$0xff]  ;;  %381 = vst [vmem:[%s1491_s29 + $0x150] sm:$0xff] %v380_v42  ;;  %383 = vst [vmem:[%s1491_s29 + $0x158] sm:$0xff] %v382_v43  ;;  %v386_v45 = vld [vmem:[%s1486_s28 + $0x2d0] sm:$0xff] }
  0x2d   : > { %385 = vst [vmem:[%s1491_s29 + $0x160] sm:$0xff] %v384_v44  ;;  %v388_v46 = vld [vmem:[%s1486_s28 + $0x2e0] sm:$0xff]  ;;  %v390_v47 = vld [vmem:[%s1486_s28 + $0x2f0] sm:$0xff]  ;;  %387 = vst [vmem:[%s1491_s29 + $0x168] sm:$0xff] %v386_v45 }
  0x2e   : > { %389 = vst [vmem:[%s1491_s29 + $0x170] sm:$0xff] %v388_v46  ;;  %391 = vst [vmem:[%s1491_s29 + $0x178] sm:$0xff] %v390_v47  ;;  %v392_v48 = vld [vmem:[%s1486_s28 + $0x300] sm:$0xff]  ;;  %v394_v49 = vld [vmem:[%s1486_s28 + $0x310] sm:$0xff] }
  0x2f   : > { %v396_v50 = vld [vmem:[%s1486_s28 + $0x320] sm:$0xff]  ;;  %393 = vst [vmem:[%s1491_s29 + $0x180] sm:$0xff] %v392_v48  ;;  %395 = vst [vmem:[%s1491_s29 + $0x188] sm:$0xff] %v394_v49  ;;  %v398_v51 = vld [vmem:[%s1486_s28 + $0x330] sm:$0xff] }
  0x30   : > { %397 = vst [vmem:[%s1491_s29 + $0x190] sm:$0xff] %v396_v50  ;;  %v400_v52 = vld [vmem:[%s1486_s28 + $0x340] sm:$0xff]  ;;  %v402_v53 = vld [vmem:[%s1486_s28 + $0x350] sm:$0xff]  ;;  %399 = vst [vmem:[%s1491_s29 + $0x198] sm:$0xff] %v398_v51 }
  0x31   : > { %401 = vst [vmem:[%s1491_s29 + $0x1a0] sm:$0xff] %v400_v52  ;;  %403 = vst [vmem:[%s1491_s29 + $0x1a8] sm:$0xff] %v402_v53  ;;  %v404_v54 = vld [vmem:[%s1486_s28 + $0x360] sm:$0xff]  ;;  %v406_v55 = vld [vmem:[%s1486_s28 + $0x370] sm:$0xff] }
  0x32   : > { %v408_v56 = vld [vmem:[%s1486_s28 + $0x380] sm:$0xff]  ;;  %405 = vst [vmem:[%s1491_s29 + $0x1b0] sm:$0xff] %v404_v54  ;;  %407 = vst [vmem:[%s1491_s29 + $0x1b8] sm:$0xff] %v406_v55  ;;  %v410_v57 = vld [vmem:[%s1486_s28 + $0x390] sm:$0xff] }
  0x33   : > { %409 = vst [vmem:[%s1491_s29 + $0x1c0] sm:$0xff] %v408_v56  ;;  %v412_v58 = vld [vmem:[%s1486_s28 + $0x3a0] sm:$0xff]  ;;  %v414_v59 = vld [vmem:[%s1486_s28 + $0x3b0] sm:$0xff]  ;;  %411 = vst [vmem:[%s1491_s29 + $0x1c8] sm:$0xff] %v410_v57 }
  0x34   : > { %413 = vst [vmem:[%s1491_s29 + $0x1d0] sm:$0xff] %v412_v58  ;;  %415 = vst [vmem:[%s1491_s29 + $0x1d8] sm:$0xff] %v414_v59  ;;  %v416_v60 = vld [vmem:[%s1486_s28 + $0x3c0] sm:$0xff]  ;;  %v418_v61 = vld [vmem:[%s1486_s28 + $0x3d0] sm:$0xff] }
  0x35   : > { %v420_v62 = vld [vmem:[%s1486_s28 + $0x3e0] sm:$0xff]  ;;  %417 = vst [vmem:[%s1491_s29 + $0x1e0] sm:$0xff] %v416_v60  ;;  %419 = vst [vmem:[%s1491_s29 + $0x1e8] sm:$0xff] %v418_v61  ;;  %v422_v63 = vld [vmem:[%s1486_s28 + $0x3f0] sm:$0xff] }
  0x36   : > { %421 = vst [vmem:[%s1491_s29 + $0x1f0] sm:$0xff] %v420_v62  ;;  %423 = vst [vmem:[%s1491_s29 + $0x1f8] sm:$0xff] %v422_v63 }
  0x37 PF: > { %p1089_p11 = scmp.ge.s32.totalorder %s1403_s14, 1  ;;  %p428_p12 = scmp.lt.s32.totalorder %s1403_s14, 3 }
  0x39   : > { %p429_p13 = pnand %p1089_p11, %p428_p12 }
  0x3a   : > { %s1621_s30 = sand.u32 (!%p429_p13), 1, %s1387_s10   ;;  %s1166_s26 = sshll.u32 (!%p429_p13), %s1395_s12, 8 }
  0x3b   : > { %432 = sbr.rel (%p429_p13) target bundleno = 347 (0x15b), region = 62  ;;  %s1090_s3 = sshll.u32 (!%p429_p13), %s1621_s30, 9 }
  0x3c   : > { %s1630_s8 = scalar_lea.vmem (!%p429_p13), [#allocation2], %s1090_s3  ;;  %s1091_s23 = sshll.u32 (!%p429_p13), %s1621_s30, 5 }
  0x3d   : > { %s461_s24 = scalar_lea.vmem (!%p429_p13), [#allocation3], %s1091_s23  ;;  %s1709_s29 = scalar_lea.hbm (!%p429_p13), %s1759_s2, %s1166_s26 }
  0x3e   : > { %s987_s25 = sshll.u32 (!%p429_p13), %s461_s24, 4  ;;  %s971_s12 = scalar_lea.sflag (!%p429_p13), [#allocation4], %s1621_s30  ;;  %s1704_s25 = int_to_ptr.vmem [resolvable:$true] %s987_s25 }
  0x3f   : > { %s1327_s3 = scalar_lea.vmem (!%p429_p13), %s1704_s25, 512  ;;  %s1405_s4 = smov (!%p429_p13), [#allocation3]  }
  0x40   : > { %v1323_v0 = vld [vmem:[%s1757_s0 + $0x4] ss:$16 sps:$4 sm:$0xff]   ;;  %v1326_v1 = vld [vmem:[%s1757_s0 + $0xc] ss:$16 sps:$4 sm:$0xff]   ;;  %v1229_v4 = vld [vmem:[%s1630_s8 + $0x70] ss:$8 sps:$4 sm:$0xff]   ;;  %p1328_p0 = scmp.ne.s32.totalorder %s1704_s25, %s1327_s3 }
  0x41   : > { %v1225_v2 = vld [vmem:[%s1630_s8 + $0x74] ss:$8 sps:$4 sm:$0xff]   ;;  %912 = vmatprep.mubr.bf16.mxu0 %v1323_v0  ;;  %955 = vmatprep.mubr.bf16.mxu1 %v1326_v1  ;;  %v1230_v5 = vld [vmem:[%s1630_s8 + $0x170] ss:$8 sps:$4 sm:$0xff]   ;;  %v1231_v6 = vld [vmem:[%s1630_s8 + $0x64] ss:$8 sps:$4 sm:$0xff]  }
  0x42   : > { %v1227_v3 = vld [vmem:[%s1630_s8 + $0x174] ss:$8 sps:$4 sm:$0xff]   ;;  %880 = vmatprep.subr.bf16.mxu0 %v1225_v2  ;;  %v1233_v7 = vld [vmem:[%s1630_s8 + $0x164] ss:$8 sps:$4 sm:$0xff]   ;;  %v1235_v8 = vld [vmem:[%s1630_s8 + $0x60] ss:$8 sps:$4 sm:$0xff]   ;;  %p1329_p1 = pnand %p1328_p0, %p1463_p5 }
  0x43   : > { %923 = vmatprep.subr.bf16.mxu1 %v1227_v3  ;;  %881 = vmatpush1.bf16.msra.mxu0 %v1229_v4  ;;  %v1236_v9 = vld [vmem:[%s1630_s8 + $0x160] ss:$8 sps:$4 sm:$0xff]   ;;  %v1237_v10 = vld [vmem:[%s1630_s8 + $0x54] ss:$8 sps:$4 sm:$0xff]   ;;  %v1241_v12 = vld [vmem:[%s1630_s8 + $0x50] ss:$8 sps:$4 sm:$0xff]  }
  0x44   : > { %924 = vmatpush1.bf16.msra.mxu1 %v1230_v5  ;;  %882 = vmatprep.subr.bf16.mxu0 %v1231_v6  ;;  %v1239_v11 = vld [vmem:[%s1630_s8 + $0x154] ss:$8 sps:$4 sm:$0xff]   ;;  %v1242_v13 = vld [vmem:[%s1630_s8 + $0x150] ss:$8 sps:$4 sm:$0xff]   ;;  %v1243_v14 = vld [vmem:[%s1630_s8 + $0x44] ss:$8 sps:$4 sm:$0xff]   ;;  %p1330_p2 = pneg %p1329_p1 }
  0x45   : > { %925 = vmatprep.subr.bf16.mxu1 %v1233_v7  ;;  %v1245_v15 = vld [vmem:[%s1630_s8 + $0x144] ss:$8 sps:$4 sm:$0xff]   ;;  %v1247_v16 = vld [vmem:[%s1630_s8 + $0x40] ss:$8 sps:$4 sm:$0xff]   ;;  %v1249_v18 = vld [vmem:[%s1630_s8 + $0x34] ss:$8 sps:$4 sm:$0xff]  }
  0x46   : > { %v1248_v17 = vld [vmem:[%s1630_s8 + $0x140] ss:$8 sps:$4 sm:$0xff]   ;;  %v1251_v19 = vld [vmem:[%s1630_s8 + $0x134] ss:$8 sps:$4 sm:$0xff]   ;;  %v1253_v20 = vld [vmem:[%s1630_s8 + $0x30] ss:$8 sps:$4 sm:$0xff]  }
  0x47   : > { %883 = vmatpush1.bf16.msra.mxu0 %v1235_v8  ;;  %v1254_v21 = vld [vmem:[%s1630_s8 + $0x130] ss:$8 sps:$4 sm:$0xff]   ;;  %v1255_v22 = vld [vmem:[%s1630_s8 + $0x24] ss:$8 sps:$4 sm:$0xff]   ;;  %v1259_v24 = vld [vmem:[%s1630_s8 + $0x20] ss:$8 sps:$4 sm:$0xff]  }
  0x48   : > { %926 = vmatpush1.bf16.msra.mxu1 %v1236_v9  ;;  %884 = vmatprep.subr.bf16.mxu0 %v1237_v10  ;;  %v1257_v23 = vld [vmem:[%s1630_s8 + $0x124] ss:$8 sps:$4 sm:$0xff]   ;;  %v1260_v25 = vld [vmem:[%s1630_s8 + $0x120] ss:$8 sps:$4 sm:$0xff]   ;;  %v1261_v26 = vld [vmem:[%s1630_s8 + $0x14] ss:$8 sps:$4 sm:$0xff]  }
  0x49   : > { %927 = vmatprep.subr.bf16.mxu1 %v1239_v11  ;;  %v1263_v27 = vld [vmem:[%s1630_s8 + $0x114] ss:$8 sps:$4 sm:$0xff]   ;;  %v1265_v28 = vld [vmem:[%s1630_s8 + $0x10] ss:$8 sps:$4 sm:$0xff]   ;;  %v1267_v30 = vld [vmem:[%s1630_s8 + $0x4] ss:$8 sps:$4 sm:$0xff]  }
  0x4a   : > { %v1266_v29 = vld [vmem:[%s1630_s8 + $0x110] ss:$8 sps:$4 sm:$0xff]   ;;  %v1269_v31 = vld [vmem:[%s1630_s8 + $0x104] ss:$8 sps:$4 sm:$0xff]   ;;  %v1271_v32 = vld [vmem:[%s1630_s8] ss:$8 sps:$4 sm:$0xff]  }
  0x4b   : > { %885 = vmatpush1.bf16.msra.mxu0 %v1241_v12  ;;  %v1272_v33 = vld [vmem:[%s1630_s8 + $0x100] ss:$8 sps:$4 sm:$0xff]   ;;  %v1273_v34 = vld [vmem:[%s1630_s8 + $0xf4] ss:$8 sps:$4 sm:$0xff]   ;;  %v1277_v36 = vld [vmem:[%s1630_s8 + $0xf0] ss:$8 sps:$4 sm:$0xff]  }
  0x4c   : > { %928 = vmatpush1.bf16.msra.mxu1 %v1242_v13  ;;  %886 = vmatprep.subr.bf16.mxu0 %v1243_v14  ;;  %v1275_v35 = vld [vmem:[%s1630_s8 + $0x1f4] ss:$8 sps:$4 sm:$0xff]   ;;  %v1278_v37 = vld [vmem:[%s1630_s8 + $0x1f0] ss:$8 sps:$4 sm:$0xff]   ;;  %v1279_v38 = vld [vmem:[%s1630_s8 + $0xe4] ss:$8 sps:$4 sm:$0xff]  }
  0x4d   : > { %929 = vmatprep.subr.bf16.mxu1 %v1245_v15  ;;  %v1281_v39 = vld [vmem:[%s1630_s8 + $0x1e4] ss:$8 sps:$4 sm:$0xff]   ;;  %v1283_v40 = vld [vmem:[%s1630_s8 + $0xe0] ss:$8 sps:$4 sm:$0xff]   ;;  %v1285_v42 = vld [vmem:[%s1630_s8 + $0xd4] ss:$8 sps:$4 sm:$0xff]  }
  0x4e   : > { %v1284_v41 = vld [vmem:[%s1630_s8 + $0x1e0] ss:$8 sps:$4 sm:$0xff]   ;;  %v1287_v43 = vld [vmem:[%s1630_s8 + $0x1d4] ss:$8 sps:$4 sm:$0xff]   ;;  %v1289_v44 = vld [vmem:[%s1630_s8 + $0xd0] ss:$8 sps:$4 sm:$0xff]  }
  0x4f   : > { %887 = vmatpush1.bf16.msra.mxu0 %v1247_v16  ;;  %v1290_v45 = vld [vmem:[%s1630_s8 + $0x1d0] ss:$8 sps:$4 sm:$0xff]   ;;  %v1291_v46 = vld [vmem:[%s1630_s8 + $0xc4] ss:$8 sps:$4 sm:$0xff]   ;;  %v1295_v48 = vld [vmem:[%s1630_s8 + $0xc0] ss:$8 sps:$4 sm:$0xff]  }
  0x50   : > { %930 = vmatpush1.bf16.msra.mxu1 %v1248_v17  ;;  %888 = vmatprep.subr.bf16.mxu0 %v1249_v18  ;;  %v1293_v47 = vld [vmem:[%s1630_s8 + $0x1c4] ss:$8 sps:$4 sm:$0xff]   ;;  %v1296_v49 = vld [vmem:[%s1630_s8 + $0x1c0] ss:$8 sps:$4 sm:$0xff]   ;;  %v1297_v50 = vld [vmem:[%s1630_s8 + $0xb4] ss:$8 sps:$4 sm:$0xff]  }
  0x51   : > { %931 = vmatprep.subr.bf16.mxu1 %v1251_v19  ;;  %v1299_v51 = vld [vmem:[%s1630_s8 + $0x1b4] ss:$8 sps:$4 sm:$0xff]   ;;  %v1301_v52 = vld [vmem:[%s1630_s8 + $0xb0] ss:$8 sps:$4 sm:$0xff]   ;;  %v1303_v54 = vld [vmem:[%s1630_s8 + $0xa4] ss:$8 sps:$4 sm:$0xff]  }
  0x52   : > { %v1302_v53 = vld [vmem:[%s1630_s8 + $0x1b0] ss:$8 sps:$4 sm:$0xff]   ;;  %v1305_v55 = vld [vmem:[%s1630_s8 + $0x1a4] ss:$8 sps:$4 sm:$0xff]   ;;  %v1307_v56 = vld [vmem:[%s1630_s8 + $0xa0] ss:$8 sps:$4 sm:$0xff]  }
  0x53   : > { %889 = vmatpush1.bf16.msra.mxu0 %v1253_v20  ;;  %v1308_v57 = vld [vmem:[%s1630_s8 + $0x1a0] ss:$8 sps:$4 sm:$0xff]   ;;  %v1309_v58 = vld [vmem:[%s1630_s8 + $0x94] ss:$8 sps:$4 sm:$0xff]   ;;  %v1313_v60 = vld [vmem:[%s1630_s8 + $0x90] ss:$8 sps:$4 sm:$0xff]  }
  0x54   : > { %932 = vmatpush1.bf16.msra.mxu1 %v1254_v21  ;;  %890 = vmatprep.subr.bf16.mxu0 %v1255_v22  ;;  %v1311_v59 = vld [vmem:[%s1630_s8 + $0x194] ss:$8 sps:$4 sm:$0xff]   ;;  %v1314_v61 = vld [vmem:[%s1630_s8 + $0x190] ss:$8 sps:$4 sm:$0xff]   ;;  %v1315_v62 = vld [vmem:[%s1630_s8 + $0x84] ss:$8 sps:$4 sm:$0xff]  }
  0x55   : > { %933 = vmatprep.subr.bf16.mxu1 %v1257_v23  ;;  %v1317_v63 = vld [vmem:[%s1630_s8 + $0x184] ss:$8 sps:$4 sm:$0xff]   ;;  %v1319_v0 = vld [vmem:[%s1630_s8 + $0x80] ss:$8 sps:$4 sm:$0xff]   ;;  %s1331_s5 = sshll.u32 %s1405_s4, 4  ;;  %s1332_s5 = int_to_ptr.vmem [resolvable:$false] %s1331_s5 }
  0x56   : > { %v1320_v1 = vld [vmem:[%s1630_s8 + $0x180] ss:$8 sps:$4 sm:$0xff]   ;;  %s1333_s6 = scalar_lea.vmem %s1332_s5, 1024  ;;  %p1334_p3 = scmp.lt.s32.totalorder %s1704_s25, %s1332_s5 }
  0x57   : > { %891 = vmatpush1.bf16.msra.mxu0 %v1259_v24  ;;  %v1321_v2 = vld [vmem:[%s1757_s0] ss:$16 sps:$4 sm:$0xff]   ;;  %v1324_v3 = vld [vmem:[%s1757_s0 + $0x8] ss:$16 sps:$4 sm:$0xff]   ;;  %p1335_p4 = scmp.lt.s32.totalorder %s1333_s6, %s1327_s3 }
  0x58   : > { %934 = vmatpush1.bf16.msra.mxu1 %v1260_v25  ;;  %892 = vmatprep.subr.bf16.mxu0 %v1261_v26 }
  0x59   : > { %935 = vmatprep.subr.bf16.mxu1 %v1263_v27  ;;  %p1336_p6 = por %p1335_p4, %p1334_p3 }
  0x5b   : > { %893 = vmatpush1.bf16.msra.mxu0 %v1265_v28  ;;  %p1337_p7 = pnand %p1336_p6, %p1330_p2 }
  0x5c   : > { %936 = vmatpush1.bf16.msra.mxu1 %v1266_v29  ;;  %894 = vmatprep.subr.bf16.mxu0 %v1267_v30 }
  0x5d   : > { %937 = vmatprep.subr.bf16.mxu1 %v1269_v31 }
  0x5f   : > { %895 = vmatpush1.bf16.msra.mxu0 %v1271_v32 }
  0x60   : > { %938 = vmatpush1.bf16.msra.mxu1 %v1272_v33  ;;  %896 = vmatprep.subr.bf16.mxu0 %v1273_v34 }
  0x61   : > { %939 = vmatprep.subr.bf16.mxu1 %v1275_v35 }
  0x63   : > { %897 = vmatpush2.bf16.msra.mxu0 %v1277_v36 }
  0x64   : > { %940 = vmatpush2.bf16.msra.mxu1 %v1278_v37  ;;  %898 = vmatprep.subr.bf16.mxu0 %v1279_v38 }
  0x65   : > { %941 = vmatprep.subr.bf16.mxu1 %v1281_v39 }
  0x67   : > { %899 = vmatpush2.bf16.msra.mxu0 %v1283_v40 }
  0x68   : > { %942 = vmatpush2.bf16.msra.mxu1 %v1284_v41  ;;  %900 = vmatprep.subr.bf16.mxu0 %v1285_v42 }
  0x69   : > { %943 = vmatprep.subr.bf16.mxu1 %v1287_v43 }
  0x6b   : > { %901 = vmatpush2.bf16.msra.mxu0 %v1289_v44 }
  0x6c   : > { %944 = vmatpush2.bf16.msra.mxu1 %v1290_v45  ;;  %902 = vmatprep.subr.bf16.mxu0 %v1291_v46 }
  0x6d   : > { %945 = vmatprep.subr.bf16.mxu1 %v1293_v47 }
  0x6f   : > { %903 = vmatpush2.bf16.msra.mxu0 %v1295_v48 }
  0x70   : > { %946 = vmatpush2.bf16.msra.mxu1 %v1296_v49  ;;  %904 = vmatprep.subr.bf16.mxu0 %v1297_v50 }
  0x71   : > { %947 = vmatprep.subr.bf16.mxu1 %v1299_v51 }
  0x73   : > { %905 = vmatpush2.bf16.msra.mxu0 %v1301_v52 }
  0x74   : > { %948 = vmatpush2.bf16.msra.mxu1 %v1302_v53  ;;  %906 = vmatprep.subr.bf16.mxu0 %v1303_v54 }
  0x75   : > { %949 = vmatprep.subr.bf16.mxu1 %v1305_v55 }
  0x77   : > { %907 = vmatpush2.bf16.msra.mxu0 %v1307_v56 }
  0x78   : > { %950 = vmatpush2.bf16.msra.mxu1 %v1308_v57  ;;  %908 = vmatprep.subr.bf16.mxu0 %v1309_v58 }
  0x79   : > { %951 = vmatprep.subr.bf16.mxu1 %v1311_v59 }
  0x7b   : > { %909 = vmatpush2.bf16.msra.mxu0 %v1313_v60 }
  0x7c   : > { %952 = vmatpush2.bf16.msra.mxu1 %v1314_v61  ;;  %910 = vmatprep.subr.bf16.mxu0 %v1315_v62 }
  0x7d   : > { %953 = vmatprep.subr.bf16.mxu1 %v1317_v63 }
  0x7f   : > { %911 = vmatpush2.bf16.msra.mxu0 %v1319_v0 }
  0x80   : > { %954 = vmatpush2.bf16.msra.mxu1 %v1320_v1 }
  0x82   : > { %913 = vmatmul.mubr.bf16.vlgmr.msra.gmra.mxu0 %v1321_v2 }
  0x83   : > { %956 = vmatmul.mubr.bf16.vlgmr.msra.gmra.mxu1 %v1324_v3 }
 0x142   : > { %v914_v4 = vpop.f32.mrf.mxu0 }
 0x143   : > { %v957_v5 = vpop.f32.mrf.mxu1 }
 0x144   : > { %v958_v6 = vadd.f32 %v957_v5, %v914_v4  ;;  %v916_v7 = vpop.f32.mrf.mxu0 }
 0x145   : > { %v959_v8 = vpop.f32.mrf.mxu1 }
 0x146   : > { %966 = vst [vmem:[%s461_s24] sm:$0xff] %v958_v6  ;;  %v960_v9 = vadd.f32 %v959_v8, %v916_v7  ;;  %v918_v10 = vpop.f32.mrf.mxu0 }
 0x147   : > { %v961_v11 = vpop.f32.mrf.mxu1 }
 0x148   : > { %967 = vst [vmem:[%s461_s24 + $0x8] sm:$0xff] %v960_v9  ;;  %v962_v12 = vadd.f32 %v961_v11, %v918_v10  ;;  %v920_v13 = vpop.f32.mrf.mxu0 }
 0x149   : > { %v963_v14 = vpop.f32.mrf.mxu1 }
 0x14a   : > { %968 = vst [vmem:[%s461_s24 + $0x10] sm:$0xff] %v962_v12  ;;  %v964_v15 = vadd.f32 %v963_v14, %v920_v13 }
 0x14c   : > { %969 = vst [vmem:[%s461_s24 + $0x18] sm:$0xff] %v964_v15 }
 0x14d   : > { %1340 = shalt.err (!%p1337_p7)
}
 0x14e   : > { %s1341_s7 = scalar_lea.hbm %s1709_s29, 512  ;;  %s1345_s16 = scalar_lea.hbm %s1759_s2, 1024 }
 0x14f   : > { %p1342_p8 = scmp.ne.s32.totalorder %s1709_s29, %s1341_s7  ;;  %p1346_p13 = scmp.lt.s32.totalorder %s1709_s29, %s1759_s2 }
 0x150   : > { %p1347_p0 = scmp.lt.s32.totalorder %s1345_s16, %s1341_s7 }
 0x151   : > { %p1343_p11 = pnand %p1342_p8, %p1463_p5 }
 0x152   : > { %p1348_p1 = por %p1347_p0, %p1346_p13 }
 0x153   : > { %p1344_p12 = pneg %p1343_p11 }
 0x155   : > { %p1349_p2 = pnand %p1348_p1, %p1344_p12 }
 0x157   : > { %1352 = shalt.err (!%p1349_p2)
}
 0x158   : > { %s1406_s23 = smov 256   ;;  %s1407_s24 = smov 512  }
 0x159   : > { %s1408_s26 = smov 16  }
 0x15a   : > { %1167 = dma.vmem_to_hbm [thread:$0]  (%p1463_p5), %s1704_s25, 512, %s1709_s29, %s971_s12, %s1406_s23, %s1407_s24, %s1408_s26  }
 0x15b PF: > { %s1002_s27 = sand.u32 1, %s1383_s9   ;;  %p1170_p3 = pnand %p1085_p10, %p1474_p9 }
 0x15c   : > { %s1003_s28 = scalar_lea.sflag [#allocation4], %s1002_s27 }
 0x15d   : > { %p1171_p4 = pneg %p1170_p3 }
 0x15f   : > { %1378 = dma.done.wait (%p1171_p4), %s1003_s28, 512  }
 0x160   : > { %1380 = vsyncadd (%p1171_p4), %s1003_s28, 4294966784  ;;  %s15_s14 = sadd.s32 1, %s1403_s14   ;;  %s1762_s9 = smov %s1387_s10 }
 0x161   : > { %p12_p6 = scmp.ge.s32.totalorder %s15_s14, 4   ;;  %s1763_s10 = smov %s1391_s11 }
 0x162   : > { %s1764_s11 = smov %s1472_s21  ;;  %s1765_s12 = smov %s1399_s13 }
 0x163   : > { %s1766_s13 = smov %s1768_s17  ;;  %14 = sbr.rel (!%p12_p6) target bundleno = 4 (0x4), region = 109 }
 0x168   :  { %1008 = vsyncpa [#allocation4], 1 }
 0x169   :  { %1010 = vsyncpa [#allocation4 + $0x1], 1 }

</bundles_post_ra>
